<compile_context>
chip_gen: v6e
topology: v6e:2x2x1
jax: 0.10.0
libtpu: 0.0.40
codegen_flags: <defaults>
</compile_context>

<pallas_src>
import functools

import jax
import jax.numpy as jnp
from jax import lax
from jax.experimental import pallas as pl
from jax.experimental.pallas import tpu as pltpu


# ----------------------------- synthetic sparsifier -------------------------

def sparsifier(w_dense):
    """Dual-sided structured sparsity: keep the max-|.| entry of each 2x2 block.

    Returns (values, indices, metadata) with
      values  : (out//2, in//2) float32
      indices : (out//2, in//2) int32 in {0,1,2,3}  == row_off*2 + col_off
      metadata: placeholder (block shape), unused by the TPU path.
    """
    out_f, in_f = w_dense.shape
    blocks = w_dense.reshape(out_f // 2, 2, in_f // 2, 2)
    blocks = jnp.transpose(blocks, (0, 2, 1, 3)).reshape(out_f // 2, in_f // 2, 4)
    indices = jnp.argmax(jnp.abs(blocks), axis=-1).astype(jnp.int32)
    values = jnp.take_along_axis(blocks, indices[..., None], axis=-1)[..., 0]
    metadata = jnp.array([2, 2], dtype=jnp.int32)
    return values, indices, metadata


def decompress_weight(values, indices):
    """Rebuild the dense (out, in) weight (used only for the reference check)."""
    rh, rw = values.shape
    onehot = jax.nn.one_hot(indices, 4, dtype=values.dtype)        # (rh, rw, 4)
    blocks = values[..., None] * onehot                            # (rh, rw, 4)
    blocks = blocks.reshape(rh, rw, 2, 2)
    return jnp.transpose(blocks, (0, 2, 1, 3)).reshape(rh * 2, rw * 2)


def padding_input(x, multiple):
    """Zero-pad the batch (first) dim of x up to a multiple of `multiple`."""
    n = x.shape[0]
    pad = (-n) % multiple
    if pad:
        x = jnp.pad(x, ((0, pad), (0, 0)))
    return x


# ------------------------------- Pallas kernel ------------------------------

def _sp_matmul_kernel(x_ref, v_ref, i_ref, o_ref):
    # x_ref: (2, B, K2) bf16   -- x_ref[0] = even input cols, x_ref[1] = odd
    # v_ref: (th, K2)   bf16   -- compressed values tile
    # i_ref: (th, K2)   int8   -- 2x2-block index (2*row_off + col_off)
    # o_ref: (2, B, th) f32    -- o_ref[0] = even output rows, o_ref[1] = odd
    xe = x_ref[0]
    xo = x_ref[1]
    v = v_ref[...]
    idx = i_ref[...].astype(jnp.int32)
    zero = jnp.zeros_like(v)

    # Per-tile decompression: pure VPU compare/select, no data movement.
    w00 = jnp.where(idx == 0, v, zero)   # row_off 0, col_off 0
    w01 = jnp.where(idx == 1, v, zero)   # row_off 0, col_off 1
    w10 = jnp.where(idx == 2, v, zero)   # row_off 1, col_off 0
    w11 = jnp.where(idx == 3, v, zero)   # row_off 1, col_off 1

    nt = (((1,), (1,)), ((), ()))        # contract the K dims of both (NT matmul)
    o_ref[0] = (lax.dot_general(xe, w00, nt, preferred_element_type=jnp.float32)
                + lax.dot_general(xo, w01, nt, preferred_element_type=jnp.float32))
    o_ref[1] = (lax.dot_general(xe, w10, nt, preferred_element_type=jnp.float32)
                + lax.dot_general(xo, w11, nt, preferred_element_type=jnp.float32))


def _pick_row_tile(out_half, k_half):
    """Largest compressed-row tile that divides out_half and fits a VMEM budget."""
    budget = 12 * 1024 * 1024  # double-buffered (bf16 values + int8 idx) per tile
    for t in (512, 256, 128):
        if out_half % t == 0 and 2 * t * k_half * 3 <= budget:
            return t
    # TODO(synk): for very large in_features a K grid axis + accumulator would
    # be needed; module defaults (in<=1024) never hit this.
    return out_half


@functools.partial(jax.jit, static_argnames=("th",))
def _spdense_forward(x_pad, values, indices, *, th):
    """out = W_sparse @ x_pad.T, W decompressed from (values, indices) in-kernel."""
    B, in_f = x_pad.shape
    K2 = in_f // 2
    out_half = values.shape[0]
    out_f = 2 * out_half

    # Even/odd split of the input columns: x_split[c, b, j] = x[b, 2j + c].
    xb = x_pad.astype(jnp.bfloat16)
    x_split = jnp.transpose(xb.reshape(B, K2, 2), (2, 0, 1))       # (2, B, K2)

    grid = (out_half // th,)
    flops = 2 * B * in_f * out_f
    bytes_accessed = (x_split.size * 2 + values.size * 2 + indices.size
                      + 2 * B * out_half * 4)

    y = pl.pallas_call(
        _sp_matmul_kernel,
        out_shape=jax.ShapeDtypeStruct((2, B, out_half), jnp.float32),
        grid_spec=pltpu.PrefetchScalarGridSpec(
            num_scalar_prefetch=0,
            grid=grid,
            in_specs=[
                pl.BlockSpec((2, B, K2), lambda j: (0, 0, 0)),   # activations
                pl.BlockSpec((th, K2), lambda j: (j, 0)),        # values (bf16)
                pl.BlockSpec((th, K2), lambda j: (j, 0)),        # indices (int8)
            ],
            out_specs=pl.BlockSpec((2, B, th), lambda j: (0, 0, j)),
        ),
        compiler_params=pltpu.CompilerParams(
            dimension_semantics=("parallel",),
            vmem_limit_bytes=32 * 1024 * 1024),
        cost_estimate=pl.CostEstimate(flops=flops, transcendentals=0,
                                      bytes_accessed=bytes_accessed),
    )(x_split, values, indices)

    # y[r, b, p] = out[2p + r, b]  ->  (out_f, padded_batch), as the module returns.
    return jnp.transpose(y, (2, 0, 1)).reshape(out_f, B)


# ------------------------------- module wrapper ------------------------------

class SPDenseLinear:
    """JAX/Pallas port of the PyTorch SPDenseLinear forward pass."""

    def __init__(self, key, in_features=1024, out_features=4096):
        assert in_features % 2 == 0 and out_features % 2 == 0
        self.in_features = in_features
        self.out_features = out_features
        w_dense = jax.random.uniform(key, (out_features, in_features),
                                     dtype=jnp.float32)  # torch.rand equivalent
        self.weight, self.indices, self.metadata = sparsifier(w_dense)
        # Kernel-side operands: compressed bf16 values + int8 indices.  The
        # dense weight is never materialized; it is rebuilt tile-by-tile on the
        # VPU inside the Pallas kernel (weight HBM stream ~5x smaller than the
        # previous dense-f32 version).
        self._values = self.weight.astype(jnp.bfloat16)
        self._indices = self.indices.astype(jnp.int8)

    def __call__(self, x):
        # x: (batch, in_features)
        x = padding_input(x, 64)          # original module pads the batch to 64
        th = _pick_row_tile(self.out_features // 2, self.in_features // 2)
        return _spdense_forward(x, self._values, self._indices, th=th)


# ----------------------------------- main ------------------------------------

if __name__ == "__main__":
    key = jax.random.PRNGKey(0)
    k_w, k_x = jax.random.split(key)

    in_features, out_features, batch = 128, 256, 8

    layer = SPDenseLinear(k_w, in_features=in_features, out_features=out_features)
    x = jax.random.normal(k_x, (batch, in_features), dtype=jnp.float32)

    out = jax.block_until_ready(layer(x))

    # Reference check: dense matmul using the same bf16-rounded operands.
    x_pad = padding_input(x, 64)
    w_dense = decompress_weight(layer._values.astype(jnp.float32), layer.indices)
    x_ref = x_pad.astype(jnp.bfloat16).astype(jnp.float32)
    ref = jnp.dot(w_dense, x_ref.T, precision=jax.lax.Precision.HIGHEST)

    assert out.shape == (out_features, x_pad.shape[0]), out.shape
    assert out.dtype == jnp.float32
    assert jnp.allclose(out, ref, atol=2e-3, rtol=2e-3), \
        float(jnp.max(jnp.abs(out - ref)))

    print("KERNEL_OK")
</pallas_src>

<mosaic_0001>
module attributes {stable_mosaic.version = 11 : i64} {
  func.func @_sp_matmul_kernel(%arg0: i32, %arg1: memref<2x64x64xbf16, #tpu.memory_space<vmem>>, %arg2: memref<128x64xbf16, #tpu.memory_space<vmem>>, %arg3: memref<128x64xi8, #tpu.memory_space<vmem>>, %arg4: memref<2x64x128xf32, #tpu.memory_space<vmem>>) attributes {dimension_semantics = [#tpu.dimension_semantics<parallel>], iteration_bounds = array<i64: 1>, scalar_prefetch = 0 : i64, scratch_operands = 0 : i64, tpu.core_type = #tpu.core_type<tc>, window_params = [{pipeline_mode = #tpu.pipeline_mode<synchronous>, transform_indices = @transform_0, window_bounds = array<i64: 2, 64, 64>}, {transform_indices = @transform_1, window_bounds = array<i64: 128, 64>}, {transform_indices = @transform_2, window_bounds = array<i64: 128, 64>}, {transform_indices = @transform_3, window_bounds = array<i64: 2, 64, 128>}]} {
    %c0 = arith.constant 0 : index
    %c0_0 = arith.constant 0 : index
    %c0_1 = arith.constant 0 : index
    %0 = vector.load %arg1[%c0, %c0_0, %c0_1] : memref<2x64x64xbf16, #tpu.memory_space<vmem>>, vector<1x64x64xbf16>
    %1 = vector.shape_cast %0 : vector<1x64x64xbf16> to vector<64x64xbf16>
    %c1 = arith.constant 1 : index
    %c0_2 = arith.constant 0 : index
    %c0_3 = arith.constant 0 : index
    %2 = vector.load %arg1[%c1, %c0_2, %c0_3] : memref<2x64x64xbf16, #tpu.memory_space<vmem>>, vector<1x64x64xbf16>
    %3 = vector.shape_cast %2 : vector<1x64x64xbf16> to vector<64x64xbf16>
    %c0_4 = arith.constant 0 : index
    %c0_5 = arith.constant 0 : index
    %4 = vector.load %arg2[%c0_4, %c0_5] : memref<128x64xbf16, #tpu.memory_space<vmem>>, vector<128x64xbf16>
    %c0_6 = arith.constant 0 : index
    %c0_7 = arith.constant 0 : index
    %5 = vector.load %arg3[%c0_6, %c0_7] : memref<128x64xi8, #tpu.memory_space<vmem>>, vector<128x64xi8>
    %6 = arith.extsi %5 : vector<128x64xi8> to vector<128x64xi32>
    %cst = arith.constant 0.000000e+00 : bf16
    %7 = vector.broadcast %cst : bf16 to vector<128x64xbf16>
    %c0_i32 = arith.constant 0 : i32
    %8 = vector.broadcast %c0_i32 : i32 to vector<128x64xi32>
    %9 = arith.cmpi eq, %6, %8 : vector<128x64xi32>
    %10 = arith.select %9, %4, %7 : vector<128x64xi1>, vector<128x64xbf16>
    %c1_i32 = arith.constant 1 : i32
    %11 = vector.broadcast %c1_i32 : i32 to vector<128x64xi32>
    %12 = arith.cmpi eq, %6, %11 : vector<128x64xi32>
    %13 = arith.select %12, %4, %7 : vector<128x64xi1>, vector<128x64xbf16>
    %c2_i32 = arith.constant 2 : i32
    %14 = vector.broadcast %c2_i32 : i32 to vector<128x64xi32>
    %15 = arith.cmpi eq, %6, %14 : vector<128x64xi32>
    %16 = arith.select %15, %4, %7 : vector<128x64xi1>, vector<128x64xbf16>
    %c3_i32 = arith.constant 3 : i32
    %17 = vector.broadcast %c3_i32 : i32 to vector<128x64xi32>
    %18 = arith.cmpi eq, %6, %17 : vector<128x64xi32>
    %19 = arith.select %18, %4, %7 : vector<128x64xi1>, vector<128x64xbf16>
    %cst_8 = arith.constant dense<0.000000e+00> : vector<64x128xf32>
    %20 = tpu.matmul %1, %10, %cst_8 {dimension_numbers = #tpu.dot_dimension_numbers<[1], [1], [0], [0], [0, 0, 1, 0], [], []>} : vector<64x64xbf16>, vector<128x64xbf16>, vector<64x128xf32> -> vector<64x128xf32>
    %cst_9 = arith.constant dense<0.000000e+00> : vector<64x128xf32>
    %21 = tpu.matmul %3, %13, %cst_9 {dimension_numbers = #tpu.dot_dimension_numbers<[1], [1], [0], [0], [0, 0, 1, 0], [], []>} : vector<64x64xbf16>, vector<128x64xbf16>, vector<64x128xf32> -> vector<64x128xf32>
    %22 = arith.addf %20, %21 : vector<64x128xf32>
    %c0_10 = arith.constant 0 : index
    %c0_11 = arith.constant 0 : index
    %c0_12 = arith.constant 0 : index
    %23 = vector.load %arg4[%c0_10, %c0_11, %c0_12] : memref<2x64x128xf32, #tpu.memory_space<vmem>>, vector<1x64x128xf32>
    %24 = vector.shape_cast %23 : vector<1x64x128xf32> to vector<64x128xf32>
    %25 = vector.shape_cast %22 : vector<64x128xf32> to vector<1x64x128xf32>
    tpu.vector_store %arg4[%c0_10, %c0_11, %c0_12], %25 {strides = array<i32>} : memref<2x64x128xf32, #tpu.memory_space<vmem>>, vector<1x64x128xf32>,
    %cst_13 = arith.constant dense<0.000000e+00> : vector<64x128xf32>
    %26 = tpu.matmul %1, %16, %cst_13 {dimension_numbers = #tpu.dot_dimension_numbers<[1], [1], [0], [0], [0, 0, 1, 0], [], []>} : vector<64x64xbf16>, vector<128x64xbf16>, vector<64x128xf32> -> vector<64x128xf32>
    %cst_14 = arith.constant dense<0.000000e+00> : vector<64x128xf32>
    %27 = tpu.matmul %3, %19, %cst_14 {dimension_numbers = #tpu.dot_dimension_numbers<[1], [1], [0], [0], [0, 0, 1, 0], [], []>} : vector<64x64xbf16>, vector<128x64xbf16>, vector<64x128xf32> -> vector<64x128xf32>
    %28 = arith.addf %26, %27 : vector<64x128xf32>
    %c1_15 = arith.constant 1 : index
    %c0_16 = arith.constant 0 : index
    %c0_17 = arith.constant 0 : index
    %29 = vector.load %arg4[%c1_15, %c0_16, %c0_17] : memref<2x64x128xf32, #tpu.memory_space<vmem>>, vector<1x64x128xf32>
    %30 = vector.shape_cast %29 : vector<1x64x128xf32> to vector<64x128xf32>
    %31 = vector.shape_cast %28 : vector<64x128xf32> to vector<1x64x128xf32>
    tpu.vector_store %arg4[%c1_15, %c0_16, %c0_17], %31 {strides = array<i32>} : memref<2x64x128xf32, #tpu.memory_space<vmem>>, vector<1x64x128xf32>,
    return
  }
  func.func @transform_0(%arg0: i32) -> (i32, i32, i32) {
    %c0_i32 = arith.constant 0 : i32
    %c0_i32_0 = arith.constant 0 : i32
    %c0_i32_1 = arith.constant 0 : i32
    %c0_i32_2 = arith.constant 0 : i32
    return %c0_i32, %c0_i32_0, %c0_i32_1 : i32, i32, i32
  }
  func.func @transform_1(%arg0: i32) -> (i32, i32) {
    %c0_i32 = arith.constant 0 : i32
    %c0_i32_0 = arith.constant 0 : i32
    return %arg0, %c0_i32 : i32, i32
  }
  func.func @transform_2(%arg0: i32) -> (i32, i32) {
    %c0_i32 = arith.constant 0 : i32
    %c0_i32_0 = arith.constant 0 : i32
    return %arg0, %c0_i32 : i32, i32
  }
  func.func @transform_3(%arg0: i32) -> (i32, i32, i32) {
    %c0_i32 = arith.constant 0 : i32
    %c0_i32_0 = arith.constant 0 : i32
    %c0_i32_1 = arith.constant 0 : i32
    return %c0_i32, %c0_i32_0, %arg0 : i32, i32, i32
  }
}

</mosaic_0001>

<bundles_post_ra>
// kernel: _spdense_forward.1
= control target key start
LH: loop header
LB: loop body
LE: loop exit
PB: predicated region body
PF: predicated region fallthrough
CT: control target
= control target key end

     0   :  { %vm320_vm7 = vcmask 523264   ;;  %v1909_v56 = vmov 0  ;;  %s1869_s1 = inlined_call_operand.vmem [shape: bf16[128,64], index: 1, kind: input, shape index: {}]   ;;  %s1870_s2 = inlined_call_operand.vmem [shape: s8[128,64], index: 2, kind: input, shape index: {}]   ;;  %s1871_s0 = inlined_call_operand.vmem [shape: bf16[2,64,64], index: 0, kind: input, shape index: {}]   ;;  %s1872_s3 = inlined_call_operand.vmem [shape: f32[2,64,128], index: 3, kind: output, shape index: {}]  }
   0x1   :  { %v51_v0 = vld [vmem:[%s1870_s2 + $0x18] sm:$0xff]  ;;  %v50_v6 = vld [vmem:[%s1870_s2 + $0x10] sm:$0xff]  ;;  %v1203_v22 = vld [vmem:[%s1871_s0 + $0x20] sm:$0xff]  }
   0x2   :  { %v1141_v1 = vunpack.c.2.s8 %v51_v0  ;;  %v1143_v2 = vunpack.c.3.s8 %v51_v0  ;;  %v1145_v3 = vunpack.c.0.s8 %v51_v0  ;;  %v1150_v4 = vld [vmem:[%s1869_s1 + $0x38] sm:$0xf]  ;;  %v1152_v5 = vunpack.c.1.s8 %v51_v0  ;;  %v1160_v7 = vld [vmem:[%s1869_s1 + $0x3c] sm:$0xf]  ;;  %v1174_v11 = vld [vmem:[%s1869_s1 + $0x30] sm:$0xf]  ;;  %998 = vmatprep.mubr.msk.bf16.mxu0 %vm320_vm7, %v1203_v22 }
   0x3   :  { %v1168_v9 = vunpack.c.2.s8 %v50_v6  ;;  %v1177_v12 = vunpack.c.3.s8 %v50_v6  ;;  %v1183_v15 = vld [vmem:[%s1869_s1 + $0x34] sm:$0xf]  ;;  %v1192_v18 = vunpack.c.0.s8 %v50_v6  ;;  %v1213_v25 = vld [vmem:[%s1869_s1 + $0x28] sm:$0xf]  ;;  %v1218_v26 = vld [vmem:[%s1869_s1 + $0x2c] sm:$0xf]  ;;  %v1221_v27 = vunpack.c.1.s8 %v50_v6 }
   0x4   :  { %vm130_vm0 = vcmp.eq.s32.totalorder %v1141_v1, 1  ;;  %vm131_vm1 = vcmp.eq.s32.totalorder %v1143_v2, 1  ;;  %vm82_vm2 = vcmp.eq.s32.totalorder %v1141_v1, 0  ;;  %vm83_vm4 = vcmp.eq.s32.totalorder %v1143_v2, 0  ;;  %v1237_v31 = vld [vmem:[%s1871_s0] sm:$0xff]   ;;  %v49_v36 = vld [vmem:[%s1870_s2 + $0x8] sm:$0xff] }
   0x5   :  { %vm146_vm3 = vmpackc.low %vm130_vm0, %vm130_vm0  ;;  %vm128_vm6 = vcmp.eq.s32.totalorder %v1145_v3, 1  ;;  %vm129_vm9 = vcmp.eq.s32.totalorder %v1152_v5, 1  ;;  %vm80_vm11 = vcmp.eq.s32.totalorder %v1145_v3, 0  ;;  %vm81_vm13 = vcmp.eq.s32.totalorder %v1152_v5, 0  ;;  %1022 = vmatprep.mubr.msk.bf16.mxu1 %vm320_vm7, %v1237_v31  ;;  %v1265_v41 = vld [vmem:[%s1869_s1 + $0x20] sm:$0xf] }
   0x6   :  { %vm147_vm5 = vmpackc.low %vm131_vm1, %vm131_vm1  ;;  %v162_v8 = vsel %vm146_vm3, %v1150_v4, 0  ;;  %vm126_vm15 = vcmp.eq.s32.totalorder %v1168_v9, 1  ;;  %vm127_vm1 = vcmp.eq.s32.totalorder %v1177_v12, 1  ;;  %vm78_vm3 = vcmp.eq.s32.totalorder %v1168_v9, 0  ;;  %v1276_v45 = vld [vmem:[%s1869_s1 + $0x24] sm:$0xf] }
   0x7   :  { %v163_v10 = vsel %vm147_vm5, %v1160_v7, 0  ;;  %vm98_vm8 = vmpackc.low %vm82_vm2, %vm82_vm2  ;;  %vm79_vm5 = vcmp.eq.s32.totalorder %v1177_v12, 0  ;;  %v1282_v47 = vunpack.c.2.s8 %v49_v36  ;;  %v1288_v49 = vunpack.c.3.s8 %v49_v36  ;;  %v1315_v59 = vld [vmem:[%s1869_s1 + $0x18] sm:$0xf]  ;;  %v1320_v60 = vld [vmem:[%s1869_s1 + $0x1c] sm:$0xf] }
   0x8   :  { %v881_v13 = vcombine.low %v162_v8, %v163_v10  ;;  %vm99_vm10 = vmpackc.low %vm83_vm4, %vm83_vm4  ;;  %v114_v14 = vsel %vm98_vm8, %v1150_v4, 0  ;;  %vm124_vm8 = vcmp.eq.s32.totalorder %v1192_v18, 1  ;;  %v1326_v62 = vunpack.c.0.s8 %v49_v36  ;;  %v48_v8 = vld [vmem:[%s1870_s2] sm:$0xff] }
   0x9   :  { %v115_v16 = vsel %vm99_vm10, %v1160_v7, 0  ;;  %vm1187_vm12 = vmpackc.low %vm128_vm6, %vm128_vm6  ;;  %vm125_vm10 = vcmp.eq.s32.totalorder %v1221_v27, 1  ;;  %v1332_v0 = vunpack.c.1.s8 %v49_v36  ;;  %v1357_v17 = vunpack.c.2.s8 %v48_v8 }
   0xa   :  { %1078 = vmatprep.subr.msk.bf16.mxu0 %vm320_vm7, %v881_v13  ;;  %v897_v19 = vcombine.low %v114_v14, %v115_v16  ;;  %v355_v20 = vsel %vm320_vm7, %v881_v13, 0  ;;  %vm145_vm14 = vmpackc.low %vm129_vm9, %vm129_vm9  ;;  %v160_v21 = vsel %vm1187_vm12, %v1174_v11, 0  ;;  %vm76_vm12 = vcmp.eq.s32.totalorder %v1192_v18, 0 }
   0xb   :  { %983 = vmatpush3.bf16.xpose.msra.mxu0 %v355_v20  ;;  %v161_v23 = vsel %vm145_vm14, %v1183_v15, 0  ;;  %vm1206_vm0 = vmpackc.low %vm80_vm11, %vm80_vm11  ;;  %vm77_vm14 = vcmp.eq.s32.totalorder %v1221_v27, 0 }
   0xc   :  { %1086 = vmatprep.subr.msk.bf16.mxu1 %vm320_vm7, %v897_v19  ;;  %v516_v28 = vsel %vm320_vm7, %v897_v19, 0  ;;  %v880_v29 = vcombine.low %v160_v21, %v161_v23  ;;  %vm97_vm2 = vmpackc.low %vm81_vm13, %vm81_vm13  ;;  %v112_v30 = vsel %vm1206_vm0, %v1174_v11, 0  ;;  %v1361_v21 = vunpack.c.3.s8 %v48_v8 }
   0xd   :  { %1007 = vmatpush3.bf16.xpose.msra.mxu1 %v516_v28  ;;  %v113_v32 = vsel %vm97_vm2, %v1183_v15, 0  ;;  %vm142_vm4 = vmpackc.low %vm126_vm15, %vm126_vm15  ;;  %vm122_vm2 = vcmp.eq.s32.totalorder %v1282_v47, 1 }
   0xe   :  { %1079 = vmatprep.subr.msk.bf16.mxu0 %vm320_vm7, %v880_v29  ;;  %v896_v33 = vcombine.low %v112_v30, %v113_v32  ;;  %vm143_vm6 = vmpackc.low %vm127_vm1, %vm127_vm1  ;;  %v158_v34 = vsel %vm142_vm4, %v1213_v25, 0  ;;  %v352_v37 = vsel %vm320_vm7, %v880_v29, 0  ;;  %vm74_vm4 = vcmp.eq.s32.totalorder %v1282_v47, 0  ;;  %v1372_v29 = vld [vmem:[%s1869_s1 + $0x10] sm:$0xf] }
   0xf   :  { %v159_v35 = vsel %vm143_vm6, %v1218_v26, 0  ;;  %vm94_vm9 = vmpackc.low %vm78_vm3, %vm78_vm3  ;;  %vm123_vm3 = vcmp.eq.s32.totalorder %v1288_v49, 1  ;;  %vm75_vm6 = vcmp.eq.s32.totalorder %v1288_v49, 0  ;;  %v1377_v30 = vld [vmem:[%s1869_s1 + $0x14] sm:$0xf] }
  0x10   :  { %1087 = vmatprep.subr.msk.bf16.mxu1 %vm320_vm7, %v896_v33  ;;  %v879_v38 = vcombine.low %v158_v34, %v159_v35  ;;  %vm95_vm11 = vmpackc.low %vm79_vm5, %vm79_vm5  ;;  %v110_v39 = vsel %vm94_vm9, %v1213_v25, 0  ;;  %v513_v43 = vsel %vm320_vm7, %v896_v33, 0  ;;  %v1388_v34 = vunpack.c.0.s8 %v48_v8 }
  0x11   :  { %v111_v40 = vsel %vm95_vm11, %v1218_v26, 0  ;;  %vm1267_vm13 = vmpackc.low %vm124_vm8, %vm124_vm8  ;;  %vm120_vm11 = vcmp.eq.s32.totalorder %v1326_v62, 1  ;;  %v1390_v35 = vunpack.c.1.s8 %v48_v8 }
  0x12   :  { %v895_v44 = vcombine.low %v110_v39, %v111_v40  ;;  %vm1278_vm15 = vmpackc.low %vm125_vm10, %vm125_vm10  ;;  %v156_v50 = vsel %vm1267_vm13, %v1265_v41, 0  ;;  %v349_v54 = vsel %vm320_vm7, %v879_v38, 0  ;;  %vm72_vm13 = vcmp.eq.s32.totalorder %v1326_v62, 0 }
  0x13   :  { %985 = vmatpush3.bf16.xpose.msra.mxu0 %v352_v37  ;;  %vm1284_vm0 = vmpackc.low %vm76_vm12, %vm76_vm12  ;;  %v157_v51 = vsel %vm1278_vm15, %v1276_v45, 0  ;;  %vm121_vm12 = vcmp.eq.s32.totalorder %v1332_v0, 1  ;;  %vm73_vm15 = vcmp.eq.s32.totalorder %v1332_v0, 0 }
  0x14   :  { %1080 = vmatprep.subr.msk.bf16.mxu0 %vm320_vm7, %v879_v38  ;;  %vm93_vm1 = vmpackc.low %vm77_vm14, %vm77_vm14  ;;  %v108_v52 = vsel %vm1284_vm0, %v1265_v41, 0  ;;  %v878_v55 = vcombine.low %v156_v50, %v157_v51  ;;  %v510_v57 = vsel %vm320_vm7, %v895_v44, 0 }
  0x15   :  { %1009 = vmatpush3.bf16.xpose.msra.mxu1 %v513_v43  ;;  %v109_v53 = vsel %vm93_vm1, %v1276_v45, 0  ;;  %vm1306_vm5 = vmpackc.low %vm122_vm2, %vm122_vm2  ;;  %vm118_vm2 = vcmp.eq.s32.totalorder %v1357_v17, 1 }
  0x16   :  { %1088 = vmatprep.subr.msk.bf16.mxu1 %vm320_vm7, %v895_v44  ;;  %v894_v58 = vcombine.low %v108_v52, %v109_v53  ;;  %vm1322_vm8 = vmpackc.low %vm123_vm3, %vm123_vm3  ;;  %v154_v10 = vsel %vm1306_vm5, %v1315_v59, 0  ;;  %v346_v19 = vsel %vm320_vm7, %v878_v55, 0  ;;  %vm70_vm5 = vcmp.eq.s32.totalorder %v1357_v17, 0  ;;  %v1440_v53 = vld [vmem:[%s1869_s1 + $0x8] sm:$0xf] }
  0x17   :  { %vm1328_vm9 = vmpackc.low %vm74_vm4, %vm74_vm4  ;;  %v155_v13 = vsel %vm1322_vm8, %v1320_v60, 0  ;;  %vm119_vm4 = vcmp.eq.s32.totalorder %v1361_v21, 1  ;;  %vm71_vm8 = vcmp.eq.s32.totalorder %v1361_v21, 0 }
  0x18   :  { %vm1335_vm10 = vmpackc.low %vm75_vm6, %vm75_vm6  ;;  %v106_v14 = vsel %vm1328_vm9, %v1315_v59, 0  ;;  %v877_v20 = vcombine.low %v154_v10, %v155_v13  ;;  %v507_v24 = vsel %vm320_vm7, %v894_v58, 0 }
  0x19   :  { %v107_v16 = vsel %vm1335_vm10, %v1320_v60, 0  ;;  %vm1363_vm14 = vmpackc.low %vm120_vm11, %vm120_vm11  ;;  %vm116_vm10 = vcmp.eq.s32.totalorder %v1388_v34, 1  ;;  %vm117_vm11 = vcmp.eq.s32.totalorder %v1390_v35, 1 }
  0x1a   :  { %v893_v28 = vcombine.low %v106_v14, %v107_v16  ;;  %vm1379_vm0 = vmpackc.low %vm121_vm12, %vm121_vm12  ;;  %v152_v37 = vsel %vm1363_vm14, %v1372_v29, 0  ;;  %v343_v44 = vsel %vm320_vm7, %v877_v20, 0 }
  0x1b   :  { %987 = vmatpush3.bf16.xpose.msra.mxu0 %v349_v54  ;;  %vm1383_vm1 = vmpackc.low %vm72_vm13, %vm72_vm13  ;;  %v153_v38 = vsel %vm1379_vm0, %v1377_v30, 0  ;;  %vm176_vm13 = vcmp.eq.s32.totalorder %v1145_v3, 2  ;;  %vm69_vm0 = vcmp.eq.s32.totalorder %v1390_v35, 0  ;;  %v1445_v54 = vld [vmem:[%s1869_s1 + $0xc] sm:$0xf] }
  0x1c   :  { %1081 = vmatprep.subr.msk.bf16.mxu0 %vm320_vm7, %v878_v55  ;;  %vm1393_vm3 = vmpackc.low %vm73_vm15, %vm73_vm15  ;;  %v104_v40 = vsel %vm1383_vm1, %v1372_v29, 0  ;;  %v876_v46 = vcombine.low %v152_v37, %v153_v38  ;;  %vm68_vm15 = vcmp.eq.s32.totalorder %v1388_v34, 0  ;;  %v504_v51 = vsel %vm320_vm7, %v893_v28, 0  ;;  %v1533_v38 = vld [vmem:[%s1869_s1] sm:$0xf] }
  0x1d   :  { %1011 = vmatpush3.bf16.xpose.msra.mxu1 %v510_v57  ;;  %vm1406_vm6 = vmpackc.low %vm118_vm2, %vm118_vm2  ;;  %v105_v42 = vsel %vm1393_vm3, %v1377_v30, 0  ;;  %vm223_vm1 = vcmp.eq.s32.totalorder %v1177_v12, 3 }
  0x1e   :  { %1089 = vmatprep.subr.msk.bf16.mxu1 %vm320_vm7, %v894_v58  ;;  %vm1417_vm9 = vmpackc.low %vm119_vm4, %vm119_vm4  ;;  %v892_v52 = vcombine.low %v104_v40, %v105_v42  ;;  %vm227_vm4 = vcmp.eq.s32.totalorder %v1143_v2, 3  ;;  %v150_v6 = vsel %vm1406_vm6, %v1440_v53, 0  ;;  %v340_v23 = vsel %vm320_vm7, %v876_v46, 0 }
  0x1f   :  { %vm1424_vm12 = vmpackc.low %vm70_vm5, %vm70_vm5  ;;  %v151_v8 = vsel %vm1417_vm9, %v1445_v54, 0  ;;  %vm175_vm5 = vcmp.eq.s32.totalorder %v1177_v12, 2  ;;  %vm220_vm9 = vcmp.eq.s32.totalorder %v1192_v18, 3 }
  0x20   :  { %vm1429_vm14 = vmpackc.low %vm71_vm8, %vm71_vm8  ;;  %v102_v16 = vsel %vm1424_vm12, %v1440_v53, 0  ;;  %v501_v36 = vsel %vm320_vm7, %v892_v52, 0 }
  0x21   :  { %vm1447_vm2 = vmpackc.low %vm116_vm10, %vm116_vm10 }
  0x22   :  { %vm1451_vm3 = vmpackc.low %vm117_vm11, %vm117_vm11 }
  0x23   :  { %989 = vmatpush3.bf16.xpose.msra.mxu0 %v346_v19  ;;  %v1910_v56 = vsel %vm1451_vm3, 4294967295, %v1909_v56  ;;  %vm1457_vm8 = vmpackc.low %vm176_vm13, %vm176_vm13  ;;  %vm1917_vm13 = vcmp.eq.s32.totalorder %v1152_v5, 2  ;;  %v103_v19 = vsel %vm1429_vm14, %v1445_v54, 0  ;;  %vm179_vm14 = vcmp.eq.s32.totalorder %v1143_v2, 2 }
  0x24   :  { %1082 = vmatprep.subr.msk.bf16.mxu0 %vm320_vm7, %v877_v20  ;;  %vm1463_vm10 = vmpackc.low %vm68_vm15, %vm68_vm15  ;;  %v208_v63 = vsel %vm1457_vm8, %v1174_v11, 0  ;;  %vm174_vm15 = vcmp.eq.s32.totalorder %v1168_v9, 2  ;;  %vm172_vm8 = vcmp.eq.s32.totalorder %v1192_v18, 2  ;;  %v891_v37 = vcombine.low %v102_v16, %v103_v19  ;;  %v1117_v18 = vld [vmem:[%s1871_s0 + $0x18] sm:$0xff]  }
  0x25   :  { %1013 = vmatpush3.bf16.xpose.msra.mxu1 %v507_v24  ;;  %vm1467_vm11 = vmpackc.low %vm69_vm0, %vm69_vm0  ;;  %vm1918_vm0 = vcmp.eq.s32.totalorder %v1168_v9, 3  ;;  %v875_v24 = vcombine.low %v150_v6, %v151_v8  ;;  %v148_v2 = vsel %vm1447_vm2, %v1533_v38, 0 }
  0x26   :  { %1090 = vmatprep.subr.msk.bf16.mxu1 %vm320_vm7, %v893_v28  ;;  %vm193_vm3 = vmpackc.low %vm1917_vm13, %vm1917_vm13 }
  0x27   :  { %v209_v10 = vsel %vm193_vm3, %v1183_v15, 0  ;;  %vm238_vm13 = vmpackc.low %vm1918_vm0, %vm1918_vm0  ;;  %vm221_vm3 = vcmp.eq.s32.totalorder %v1221_v27, 3  ;;  %vm173_vm0 = vcmp.eq.s32.totalorder %v1221_v27, 2 }
  0x28   :  { %v1492_v13 = vcombine.low %v208_v63, %v209_v10  ;;  %vm239_vm6 = vmpackc.low %vm223_vm1, %vm223_vm1  ;;  %v254_v14 = vsel %vm238_vm13, %v1213_v25, 0  ;;  %vm218_vm13 = vcmp.eq.s32.totalorder %v1282_v47, 3 }
  0x29   :  { %v255_v20 = vsel %vm239_vm6, %v1218_v26, 0  ;;  %vm1510_vm1 = vmpackc.low %vm174_vm15, %vm174_vm15 }
  0x2a   :  { %v1516_v28 = vcombine.low %v254_v14, %v255_v20  ;;  %vm191_vm12 = vmpackc.low %vm175_vm5, %vm175_vm5  ;;  %v206_v32 = vsel %vm1510_vm1, %v1213_v25, 0  ;;  %v1538_v25 = vld [vmem:[%s1869_s1 + $0x4] sm:$0xf]  ;;  %vm1923_vm5 = vcmp.eq.s32.totalorder %v1141_v1, 3 }
  0x2b   :  { %991 = vmatpush3.bf16.xpose.msra.mxu0 %v343_v44  ;;  %v207_v9 = vsel %vm191_vm12, %v1218_v26, 0  ;;  %vm1523_vm15 = vmpackc.low %vm220_vm9, %vm220_vm9  ;;  %v1731_v26 = vld [vmem:[%s1871_s0 + $0x28] sm:$0xff]   ;;  %v1116_v44 = vld [vmem:[%s1871_s0 + $0x38] sm:$0xff]  }
  0x2c   :  { %1083 = vmatprep.subr.msk.bf16.mxu0 %vm320_vm7, %v876_v46  ;;  %vm1543_vm6 = vmpackc.low %vm1923_vm5, %vm1923_vm5  ;;  %v1554_v40 = vcombine.low %v206_v32, %v207_v9  ;;  %v252_v42 = vsel %vm1523_vm15, %v1265_v41, 0  ;;  %vm219_vm5 = vcmp.eq.s32.totalorder %v1288_v49, 3 }
  0x2d   :  { %1015 = vmatpush3.bf16.xpose.msra.mxu1 %v504_v51  ;;  %vm1550_vm9 = vmpackc.low %vm227_vm4, %vm227_vm4  ;;  %v258_v14 = vsel %vm1543_vm6, %v1150_v4, 0  ;;  %vm212_vm6 = vcmp.eq.s32.totalorder %v1388_v34, 3 }
  0x2e   :  { %1091 = vmatprep.subr.msk.bf16.mxu1 %vm320_vm7, %v892_v52  ;;  %vm237_vm1 = vmpackc.low %vm221_vm3, %vm221_vm3  ;;  %vm1930_vm3 = vcmp.eq.s32.totalorder %v1141_v1, 2  ;;  %v101_v52 = vsel %vm1467_vm11, %v1538_v25, 0 }
  0x2f   :  { %v253_v43 = vsel %vm237_vm1, %v1276_v45, 0  ;;  %vm1567_vm4 = vmpackc.low %vm172_vm8, %vm172_vm8  ;;  %vm171_vm8 = vcmp.eq.s32.totalorder %v1288_v49, 2 }
  0x30   :  { %vm1576_vm15 = vmpackc.low %vm1930_vm3, %vm1930_vm3  ;;  %v1588_v48 = vcombine.low %v252_v42, %v253_v43  ;;  %v204_v1 = vsel %vm1567_vm4, %v1265_v41, 0  ;;  %vm170_vm3 = vcmp.eq.s32.totalorder %v1282_v47, 2  ;;  %vm216_vm4 = vcmp.eq.s32.totalorder %v1326_v62, 3 }
  0x31   :  { %vm1583_vm1 = vmpackc.low %vm179_vm14, %vm179_vm14  ;;  %vm1935_vm14 = vnez %v1910_v56  ;;  %v337_v56 = vsel %vm320_vm7, %v875_v24, 0  ;;  %v498_v47 = vsel %vm320_vm7, %v891_v37, 0 }
  0x32   :  { %vm189_vm12 = vmpackc.low %vm173_vm0, %vm173_vm0  ;;  %v149_v50 = vsel %vm1935_vm14, %v1538_v25, 0  ;;  %vm214_vm14 = vcmp.eq.s32.totalorder %v1357_v17, 3  ;;  %v211_v20 = vsel %vm1583_vm1, %v1160_v7, 0  ;;  %vm165_vm1 = vcmp.eq.s32.totalorder %v1390_v35, 2 }
  0x33   :  { %993 = vmatpush3.bf16.xpose.msra.mxu0 %v340_v23  ;;  %v205_v51 = vsel %vm189_vm12, %v1276_v45, 0  ;;  %vm234_vm0 = vmpackc.low %vm218_vm13, %vm218_vm13  ;;  %vm217_vm12 = vcmp.eq.s32.totalorder %v1332_v0, 3  ;;  %v100_v45 = vsel %vm1463_vm10, %v1533_v38, 0  ;;  %v874_v57 = vcombine.low %v148_v2, %v149_v50 }
  0x34   :  { %1084 = vmatprep.subr.msk.bf16.mxu0 %vm320_vm7, %v875_v24  ;;  %v1609_v27 = vcombine.low %v204_v1, %v205_v51  ;;  %vm235_vm2 = vmpackc.low %vm219_vm5, %vm219_vm5  ;;  %v250_v41 = vsel %vm234_vm0, %v1315_v59, 0  ;;  %vm168_vm5 = vcmp.eq.s32.totalorder %v1326_v62, 2  ;;  %v890_v6 = vcombine.low %v100_v45, %v101_v52 }
  0x35   :  { %1017 = vmatpush3.bf16.xpose.msra.mxu1 %v501_v36  ;;  %v251_v55 = vsel %vm235_vm2, %v1320_v60, 0  ;;  %vm1627_vm13 = vmpackc.low %vm170_vm3, %vm170_vm3  ;;  %vm169_vm3 = vcmp.eq.s32.totalorder %v1332_v0, 2  ;;  %vm1938_vm0 = vcmp.eq.s32.totalorder %v1145_v3, 3  ;;  %v259_v62 = vsel %vm1550_vm9, %v1160_v7, 0 }
  0x36   :  { %1092 = vmatprep.subr.msk.bf16.mxu1 %vm320_vm7, %v891_v37  ;;  %v1633_v58 = vcombine.low %v250_v41, %v251_v55  ;;  %vm187_vm10 = vmpackc.low %vm171_vm8, %vm171_vm8  ;;  %v202_v61 = vsel %vm1627_vm13, %v1315_v59, 0  ;;  %vm1941_vm8 = vcmp.eq.s32.totalorder %v1152_v5, 3  ;;  %v334_v12 = vsel %vm320_vm7, %v874_v57, 0 }
  0x37   :  { %v203_v63 = vsel %vm187_vm10, %v1320_v60, 0  ;;  %vm232_vm11 = vmpackc.low %vm216_vm4, %vm216_vm4  ;;  %v909_v23 = vcombine.low %v258_v14, %v259_v62  ;;  %v495_v7 = vsel %vm320_vm7, %v890_v6, 0  ;;  %v779_v1 = vsel %vm320_vm7, %v1492_v13, 0 }
  0x38   :  { %vm1645_vm2 = vmpackc.low %vm1938_vm0, %vm1938_vm0  ;;  %v1656_v60 = vcombine.low %v202_v61, %v203_v63  ;;  %v248_v3 = vsel %vm232_vm11, %v1372_v29, 0  ;;  %vm215_vm0 = vcmp.eq.s32.totalorder %v1361_v21, 3  ;;  %vm167_vm11 = vcmp.eq.s32.totalorder %v1361_v21, 2 }
  0x39   :  { %vm1652_vm13 = vmpackc.low %vm1941_vm8, %vm1941_vm8  ;;  %v776_v2 = vsel %vm320_vm7, %v1554_v40, 0 }
  0x3a   :  { %vm233_vm4 = vmpackc.low %vm217_vm12, %vm217_vm12  ;;  %vm166_vm12 = vcmp.eq.s32.totalorder %v1357_v17, 2  ;;  %v257_v37 = vsel %vm1652_vm13, %v1183_v15, 0  ;;  %v653_v15 = vsel %vm320_vm7, %v909_v23, 0 }
  0x3b   :  { %995 = vmatpush3.bf16.xpose.msra.mxu0 %v337_v56  ;;  %v249_v10 = vsel %vm233_vm4, %v1377_v30, 0  ;;  %vm184_vm10 = vmpackc.low %vm168_vm5, %vm168_vm5  ;;  %vm213_vm4 = vcmp.eq.s32.totalorder %v1390_v35, 3  ;;  %v256_v35 = vsel %vm1645_vm2, %v1174_v11, 0  ;;  %v1113_v11 = vld [vmem:[%s1871_s0 + $0x8] sm:$0xff]  }
  0x3c   :  { %1085 = vmatprep.subr.msk.bf16.mxu0 %vm320_vm7, %v874_v57  ;;  %v1668_v5 = vcombine.low %v248_v3, %v249_v10  ;;  %vm185_vm8 = vmpackc.low %vm169_vm3, %vm169_vm3  ;;  %v200_v0 = vsel %vm184_vm10, %v1372_v29, 0  ;;  %v908_v42 = vcombine.low %v256_v35, %v257_v37 }
  0x3d   :  { %1019 = vmatpush3.bf16.xpose.msra.mxu1 %v498_v47  ;;  %v201_v16 = vsel %vm185_vm8, %v1377_v30, 0  ;;  %vm230_vm5 = vmpackc.low %vm214_vm14, %vm214_vm14  ;;  %v210_v30 = vsel %vm1576_vm15, %v1150_v4, 0  ;;  %vm164_vm14 = vcmp.eq.s32.totalorder %v1388_v34, 2 }
  0x3e   :  { %1093 = vmatprep.subr.msk.bf16.mxu1 %vm320_vm7, %v890_v6  ;;  %v1684_v29 = vcombine.low %v200_v0, %v201_v16  ;;  %vm231_vm3 = vmpackc.low %vm215_vm0, %vm215_vm0  ;;  %v246_v19 = vsel %vm230_vm5, %v1440_v53, 0  ;;  %v921_v17 = vcombine.low %v210_v30, %v211_v20  ;;  %v650_v46 = vsel %vm320_vm7, %v908_v42, 0 }
  0x3f   :  { %v247_v21 = vsel %vm231_vm3, %v1445_v54, 0  ;;  %vm182_vm9 = vmpackc.low %vm166_vm12, %vm166_vm12 }
  0x40   :  { %v1701_v24 = vcombine.low %v246_v19, %v247_v21  ;;  %vm183_vm10 = vmpackc.low %vm167_vm11, %vm167_vm11  ;;  %v198_v4 = vsel %vm182_vm9, %v1440_v53, 0  ;;  %v782_v43 = vsel %vm320_vm7, %v921_v17, 0  ;;  %v767_v50 = vsel %vm320_vm7, %v1684_v29, 0 }
  0x41   :  { %v199_v32 = vsel %vm183_vm10, %v1445_v54, 0  ;;  %vm228_vm15 = vmpackc.low %vm212_vm6, %vm212_vm6 }
  0x42   :  { %v1707_v9 = vcombine.low %v198_v4, %v199_v32  ;;  %vm229_vm0 = vmpackc.low %vm213_vm4, %vm213_vm4  ;;  %v244_v33 = vsel %vm228_vm15, %v1533_v38, 0  ;;  %v635_v51 = vsel %vm320_vm7, %v1701_v24, 0 }
  0x43   :  { %997 = vmatpush3.bf16.xpose.msra.mxu0 %v334_v12  ;;  %v245_v36 = vsel %vm229_vm0, %v1538_v25, 0  ;;  %vm180_vm8 = vmpackc.low %vm164_vm14, %vm164_vm14 }
  0x44   :  { %1094 = vmatprep.subr.msk.bf16.mxu0 %vm320_vm7, %v909_v23  ;;  %v1718_v53 = vcombine.low %v244_v33, %v245_v36  ;;  %vm181_vm12 = vmpackc.low %vm165_vm1, %vm165_vm1  ;;  %v196_v54 = vsel %vm180_vm8, %v1533_v38, 0  ;;  %v1114_v38 = vld [vmem:[%s1871_s0 + $0x30] sm:$0xff]  }
  0x45   :  { %1021 = vmatpush3.bf16.xpose.msra.mxu1 %v495_v7  ;;  %v197_v34 = vsel %vm181_vm12, %v1538_v25, 0  ;;  %v1115_v25 = vld [vmem:[%s1871_s0 + $0x10] sm:$0xff]  }
  0x46   :  { %1102 = vmatprep.subr.msk.bf16.mxu1 %vm320_vm7, %v921_v17  ;;  %v914_v39 = vcombine.low %v196_v54, %v197_v34  ;;  %v632_v41 = vsel %vm320_vm7, %v1718_v53, 0 }
  0x48   :  { %v761_v45 = vsel %vm320_vm7, %v914_v39, 0 }
  0x4a   :  { %999 = vmatmul.mubr.msk.bf16.vlgmr.msra.gmra.mxu0 %vm320_vm7, %v1731_v26 }
  0x4b   :  { %1031 = vmatpush3.bf16.xpose.msra.mxu0 %v653_v15  ;;  %1002 = vmatprep.mubr.msk.bf16.mxu0 %vm320_vm7, %v1114_v38 }
  0x4c   :  { %1023 = vmatmul.mubr.msk.bf16.vlgmr.msra.gmra.mxu1 %vm320_vm7, %v1113_v11  ;;  %1095 = vmatprep.subr.msk.bf16.mxu0 %vm320_vm7, %v908_v42 }
  0x4d   :  { %1055 = vmatpush3.bf16.xpose.msra.mxu1 %v782_v43  ;;  %1026 = vmatprep.mubr.msk.bf16.mxu1 %vm320_vm7, %v1115_v25 }
  0x4e   :  { %1103 = vmatprep.subr.msk.bf16.mxu1 %vm320_vm7, %v1492_v13  ;;  %v647_v13 = vsel %vm320_vm7, %v1516_v28, 0 }
  0x52   :  { %1003 = vmatmul.mubr.msk.bf16.gmra.mxu0 %vm320_vm7, %v1116_v44 }
  0x53   :  { %1033 = vmatpush3.bf16.xpose.msra.mxu0 %v650_v46  ;;  %1046 = vmatprep.mubr.msk.bf16.mxu0 %vm320_vm7, %v1203_v22  ;;  %v644_v22 = vsel %vm320_vm7, %v1588_v48, 0 }
  0x54   :  { %1096 = vmatprep.subr.msk.bf16.mxu0 %vm320_vm7, %v1516_v28  ;;  %1027 = vmatmul.mubr.msk.bf16.gmra.mxu1 %vm320_vm7, %v1117_v18  ;;  %v641_v28 = vsel %vm320_vm7, %v1633_v58, 0 }
  0x55   :  { %1057 = vmatpush3.bf16.xpose.msra.mxu1 %v779_v1  ;;  %1070 = vmatprep.mubr.msk.bf16.mxu1 %vm320_vm7, %v1237_v31  ;;  %v773_v31 = vsel %vm320_vm7, %v1609_v27, 0 }
  0x56   :  { %1104 = vmatprep.subr.msk.bf16.mxu1 %vm320_vm7, %v1554_v40  ;;  %v770_v40 = vsel %vm320_vm7, %v1656_v60, 0 }
  0x5b   :  { %1035 = vmatpush3.bf16.xpose.msra.mxu0 %v647_v13 }
  0x5c   :  { %1097 = vmatprep.subr.msk.bf16.mxu0 %vm320_vm7, %v1588_v48  ;;  %v638_v48 = vsel %vm320_vm7, %v1668_v5, 0 }
  0x5d   :  { %1059 = vmatpush3.bf16.xpose.msra.mxu1 %v776_v2 }
  0x5e   :  { %1105 = vmatprep.subr.msk.bf16.mxu1 %vm320_vm7, %v1609_v27  ;;  %v764_v27 = vsel %vm320_vm7, %v1707_v9, 0 }
  0x63   :  { %1037 = vmatpush3.bf16.xpose.msra.mxu0 %v644_v22 }
  0x64   :  { %1098 = vmatprep.subr.msk.bf16.mxu0 %vm320_vm7, %v1633_v58 }
  0x65   :  { %1061 = vmatpush3.bf16.xpose.msra.mxu1 %v773_v31 }
  0x66   :  { %1106 = vmatprep.subr.msk.bf16.mxu1 %vm320_vm7, %v1656_v60 }
  0x6b   :  { %1039 = vmatpush3.bf16.xpose.msra.mxu0 %v641_v28 }
  0x6c   :  { %1099 = vmatprep.subr.msk.bf16.mxu0 %vm320_vm7, %v1668_v5 }
  0x6d   :  { %1063 = vmatpush3.bf16.xpose.msra.mxu1 %v770_v40 }
  0x6e   :  { %1107 = vmatprep.subr.msk.bf16.mxu1 %vm320_vm7, %v1684_v29 }
  0x73   :  { %1041 = vmatpush3.bf16.xpose.msra.mxu0 %v638_v48 }
  0x74   :  { %1100 = vmatprep.subr.msk.bf16.mxu0 %vm320_vm7, %v1701_v24 }
  0x75   :  { %1065 = vmatpush3.bf16.xpose.msra.mxu1 %v767_v50 }
  0x76   :  { %1108 = vmatprep.subr.msk.bf16.mxu1 %vm320_vm7, %v1707_v9 }
  0x7b   :  { %1043 = vmatpush3.bf16.xpose.msra.mxu0 %v635_v51 }
  0x7c   :  { %1101 = vmatprep.subr.msk.bf16.mxu0 %vm320_vm7, %v1718_v53 }
  0x7d   :  { %1067 = vmatpush3.bf16.xpose.msra.mxu1 %v764_v27 }
  0x7e   :  { %1109 = vmatprep.subr.msk.bf16.mxu1 %vm320_vm7, %v914_v39 }
  0x83   :  { %1045 = vmatpush3.bf16.xpose.msra.mxu0 %v632_v41 }
  0x85   :  { %1069 = vmatpush3.bf16.xpose.msra.mxu1 %v761_v45 }
  0x8a   :  { %1047 = vmatmul.mubr.msk.bf16.vlgmr.msra.gmra.mxu0 %vm320_vm7, %v1731_v26 }
  0x8b   :  { %1050 = vmatprep.mubr.msk.bf16.mxu0 %vm320_vm7, %v1114_v38 }
  0x8c   :  { %1071 = vmatmul.mubr.msk.bf16.vlgmr.msra.gmra.mxu1 %vm320_vm7, %v1113_v11 }
  0x8d   :  { %1074 = vmatprep.mubr.msk.bf16.mxu1 %vm320_vm7, %v1115_v25 }
  0x92   :  { %1051 = vmatmul.mubr.msk.bf16.gmra.mxu0 %vm320_vm7, %v1116_v44 }
  0x94   :  { %1075 = vmatmul.mubr.msk.bf16.gmra.mxu1 %vm320_vm7, %v1117_v18 }
 0x10a   :  { %v1000_v52 = vpop.f32.mrf.mxu0 }
 0x10c   :  { %v1024_v55 = vpop.f32.mrf.mxu1  ;;  %v391_v49 = vpop.f32.mrf.mxu0 }
 0x10d   :  { %v561_v56 = vadd.f32 %v1024_v55, %v1000_v52 }
 0x10e   :  { %v552_v57 = vpop.f32.mrf.mxu1  ;;  %v1001_v58 = vpop.f32.mrf.mxu0 }
 0x10f   :  { %585 = vst [vmem:[%s1872_s3 + $0x10] sm:$0xff] %v561_v56  ;;  %v553_v61 = vadd.f32 %v552_v57, %v391_v49 }
 0x110   :  { %v1025_v63 = vpop.f32.mrf.mxu1  ;;  %v394_v47 = vpop.f32.mrf.mxu0 }
 0x111   :  { %583 = vst [vmem:[%s1872_s3] sm:$0xff] %v553_v61  ;;  %v564_v6 = vadd.f32 %v1025_v63, %v1001_v58 }
 0x112   :  { %v555_v8 = vpop.f32.mrf.mxu1  ;;  %v1004_v59 = vpop.f32.mrf.mxu0 }
 0x113   :  { %586 = vst [vmem:[%s1872_s3 + $0x18] sm:$0xff] %v564_v6  ;;  %v556_v60 = vadd.f32 %v555_v8, %v394_v47 }
 0x114   :  { %v1028_v3 = vpop.f32.mrf.mxu1  ;;  %v407_v10 = vpop.f32.mrf.mxu0 }
 0x115   :  { %584 = vst [vmem:[%s1872_s3 + $0x8] sm:$0xff] %v556_v60  ;;  %v577_v5 = vadd.f32 %v1028_v3, %v1004_v59 }
 0x116   :  { %v568_v0 = vpop.f32.mrf.mxu1  ;;  %v1005_v14 = vpop.f32.mrf.mxu0 }
 0x117   :  { %589 = vst [vmem:[%s1872_s3 + $0x30] sm:$0xff] %v577_v5  ;;  %v569_v62 = vadd.f32 %v568_v0, %v407_v10 }
 0x118   :  { %v1029_v16 = vpop.f32.mrf.mxu1  ;;  %v410_v29 = vpop.f32.mrf.mxu0 }
 0x119   :  { %587 = vst [vmem:[%s1872_s3 + $0x20] sm:$0xff] %v569_v62  ;;  %v580_v19 = vadd.f32 %v1029_v16, %v1005_v14 }
 0x11a   :  { %v571_v30 = vpop.f32.mrf.mxu1 }
 0x11b   :  { %590 = vst [vmem:[%s1872_s3 + $0x38] sm:$0xff] %v580_v19  ;;  %v572_v20 = vadd.f32 %v571_v30, %v410_v29 }
 0x11d   :  { %588 = vst [vmem:[%s1872_s3 + $0x28] sm:$0xff] %v572_v20 }
 0x14a   :  { %v1048_v21 = vpop.f32.mrf.mxu0 }
 0x14c   :  { %v1072_v12 = vpop.f32.mrf.mxu1  ;;  %v689_v23 = vpop.f32.mrf.mxu0 }
 0x14d   :  { %v827_v24 = vadd.f32 %v1072_v12, %v1048_v21 }
 0x14e   :  { %v818_v4 = vpop.f32.mrf.mxu1  ;;  %v1049_v32 = vpop.f32.mrf.mxu0 }
 0x14f   :  { %928 = vst [vmem:[%s1872_s3 + $0x50] sm:$0xff] %v827_v24  ;;  %v819_v7 = vadd.f32 %v818_v4, %v689_v23 }
 0x150   :  { %v1073_v17 = vpop.f32.mrf.mxu1  ;;  %v692_v9 = vpop.f32.mrf.mxu0 }
 0x151   :  { %926 = vst [vmem:[%s1872_s3 + $0x40] sm:$0xff] %v819_v7  ;;  %v830_v33 = vadd.f32 %v1073_v17, %v1049_v32 }
 0x152   :  { %v821_v36 = vpop.f32.mrf.mxu1  ;;  %v1052_v53 = vpop.f32.mrf.mxu0 }
 0x153   :  { %929 = vst [vmem:[%s1872_s3 + $0x58] sm:$0xff] %v830_v33  ;;  %v822_v54 = vadd.f32 %v821_v36, %v692_v9 }
 0x154   :  { %v1076_v35 = vpop.f32.mrf.mxu1  ;;  %v705_v37 = vpop.f32.mrf.mxu0 }
 0x155   :  { %927 = vst [vmem:[%s1872_s3 + $0x48] sm:$0xff] %v822_v54  ;;  %v843_v34 = vadd.f32 %v1076_v35, %v1052_v53 }
 0x156   :  { %v834_v26 = vpop.f32.mrf.mxu1  ;;  %v1053_v39 = vpop.f32.mrf.mxu0 }
 0x157   :  { %932 = vst [vmem:[%s1872_s3 + $0x70] sm:$0xff] %v843_v34  ;;  %v835_v38 = vadd.f32 %v834_v26, %v705_v37 }
 0x158   :  { %v1077_v11 = vpop.f32.mrf.mxu1  ;;  %v708_v15 = vpop.f32.mrf.mxu0 }
 0x159   :  { %930 = vst [vmem:[%s1872_s3 + $0x60] sm:$0xff] %v835_v38  ;;  %v846_v42 = vadd.f32 %v1077_v11, %v1053_v39 }
 0x15a   :  { %v837_v25 = vpop.f32.mrf.mxu1 }
 0x15b   :  { %933 = vst [vmem:[%s1872_s3 + $0x78] sm:$0xff] %v846_v42  ;;  %v838_v43 = vadd.f32 %v837_v25, %v708_v15 }
 0x15d   :  { %931 = vst [vmem:[%s1872_s3 + $0x68] sm:$0xff] %v838_v43 }

</bundles_post_ra>
